<compile_context>
chip_gen: v7x
topology: tpu7x:2x2x1
jax: 0.10.0
libtpu: 0.0.40
codegen_flags: <defaults>
</compile_context>

<pallas_src>
import functools

import jax
import jax.numpy as jnp
import numpy as np
from jax.experimental import pallas as pl
from jax.experimental.pallas import tpu as pltpu


def _softmax_last(x):
    m = jnp.max(x, axis=-1, keepdims=True)
    e = jnp.exp(x - m)
    return e / jnp.sum(e, axis=-1, keepdims=True)


def coattn_kernel(lens_ref,                # scalar prefetch: (B,) int32 in SMEM
                  v_ref,                   # (BB, H, R)
                  q_ref,                   # (BB, L, H)
                  wb_ref, wv_ref, wq_ref,  # (H,H), (K,H), (K,H)
                  whv_ref, whq_ref,        # (K,1), (K,1)
                  a_v_ref, a_q_ref, v_out_ref, q_out_ref,  # (BB,1,R),(BB,1,L),(BB,1,H),(BB,1,H)
                  *, BB, L, R):
    f32 = jnp.float32
    Wb = wb_ref[...]
    Wv = wv_ref[...]
    Wq = wq_ref[...]
    K = Wv.shape[0]

    # Hoisted out of the unrolled loop (JAX does not CSE broadcast_in_dim).
    whv_R = jnp.broadcast_to(whv_ref[...], (K, R))          # (K,R)
    whq_L = jnp.broadcast_to(whq_ref[...], (K, L))          # (K,L)
    idx = jax.lax.broadcasted_iota(jnp.int32, (1, L), 1)

    base = pl.program_id(0) * BB
    av_rows, aq_rows, v_rows, q_rows = [], [], [], []

    # Unrolled at trace time; per-example chains are independent so the
    # scheduler is free to interleave them.
    for b in range(BB):
        V_b = v_ref[b]                    # (H, R) -- leading-axis ref index, tile-aligned
        Q_b = q_ref[b]                    # (L, H)

        WbV = jnp.dot(Wb, V_b, preferred_element_type=f32)                       # (H,R)
        WvV = jnp.dot(Wv, V_b, preferred_element_type=f32)                       # (K,R)
        # W_q @ Q^T without an explicit transpose: contract H against H.
        WqQt = jax.lax.dot_general(Wq, Q_b, (((1,), (1,)), ((), ())),
                                   preferred_element_type=f32)                    # (K,L)
        C = jnp.dot(Q_b, WbV, preferred_element_type=f32)                          # (L,R)

        H_v = jnp.tanh(WvV + jnp.dot(WqQt, C, preferred_element_type=f32))        # (K,R)
        # (W_v V) @ C^T folded into dot_general (contract R against R).
        H_q = jnp.tanh(WqQt + jax.lax.dot_general(WvV, C, (((1,), (1,)), ((), ())),
                                                  preferred_element_type=f32))    # (K,L)

        # 1-row projections as VPU multiply + sublane reduce (MXU stays free).
        a_v = _softmax_last(jnp.sum(whv_R * H_v, axis=0, keepdims=True))          # (1,R)
        a_q = _softmax_last(jnp.sum(whq_L * H_q, axis=0, keepdims=True))          # (1,L)

        # masked_softmax: re-softmax the already-softmaxed a_q with positions
        # >= length set to -inf (faithful to the PyTorch reference).
        length = lens_ref[base + b]
        masked_a_q = _softmax_last(jnp.where(idx < length, a_q, -jnp.inf))        # (1,L)

        # v = a_v @ V^T (contract R vs R); q = masked_a_q @ Q.
        v_b = jax.lax.dot_general(a_v, V_b, (((1,), (1,)), ((), ())),
                                  preferred_element_type=f32)                     # (1,H)
        q_b = jnp.dot(masked_a_q, Q_b, preferred_element_type=f32)                # (1,H)

        av_rows.append(a_v[None])          # (1,1,R)
        aq_rows.append(masked_a_q[None])   # (1,1,L)
        v_rows.append(v_b[None])           # (1,1,H)
        q_rows.append(q_b[None])           # (1,1,H)

    # Exactly one (multi-row) store per output per grid step.
    def _stack(rows):
        return rows[0] if BB == 1 else jnp.concatenate(rows, axis=0)

    a_v_ref[...] = _stack(av_rows)
    a_q_ref[...] = _stack(aq_rows)
    v_out_ref[...] = _stack(v_rows)
    q_out_ref[...] = _stack(q_rows)


def _pick_batch_block(B):
    # v7x has two TensorCores per chip: split the batch across them via the
    # grid.  On v5e/v6e (single TC) a whole-batch block avoids the ~0.35us
    # per-step grid overhead.
    try:
        kind = jax.devices()[0].device_kind.lower()
    except Exception:
        kind = ""
    if "v7" in kind and B > 1 and B % 2 == 0:
        return B // 2
    return B


def parallel_co_attention(V, Q, Q_lengths, W_b, W_v, W_q, w_hv, w_hq,
                          *, batch_block=None, vmem_limit_bytes=None):
    B, H, R = V.shape
    _, L, _ = Q.shape
    K = W_v.shape[0]

    BB = batch_block if batch_block is not None else _pick_batch_block(B)
    if BB <= 0 or B % BB != 0:
        BB = B
    n_blocks = B // BB

    lens = Q_lengths.astype(jnp.int32)
    kernel = functools.partial(coattn_kernel, BB=BB, L=L, R=R)

    grid_spec = pltpu.PrefetchScalarGridSpec(
        num_scalar_prefetch=1,
        grid=(n_blocks,),
        in_specs=[
            pl.BlockSpec((BB, H, R), lambda i, _lens: (i, 0, 0)),   # V (batch-leading)
            pl.BlockSpec((BB, L, H), lambda i, _lens: (i, 0, 0)),   # Q (batch-leading)
            pl.BlockSpec((H, H), lambda i, _lens: (0, 0)),          # W_b (resident)
            pl.BlockSpec((K, H), lambda i, _lens: (0, 0)),          # W_v (resident)
            pl.BlockSpec((K, H), lambda i, _lens: (0, 0)),          # W_q (resident)
            pl.BlockSpec((K, 1), lambda i, _lens: (0, 0)),          # w_hv
            pl.BlockSpec((K, 1), lambda i, _lens: (0, 0)),          # w_hq
        ],
        out_specs=[
            pl.BlockSpec((BB, 1, R), lambda i, _lens: (i, 0, 0)),   # a_v
            pl.BlockSpec((BB, 1, L), lambda i, _lens: (i, 0, 0)),   # masked_a_q
            pl.BlockSpec((BB, 1, H), lambda i, _lens: (i, 0, 0)),   # v
            pl.BlockSpec((BB, 1, H), lambda i, _lens: (i, 0, 0)),   # q
        ],
    )
    out_shapes = (
        jax.ShapeDtypeStruct((B, 1, R), jnp.float32),
        jax.ShapeDtypeStruct((B, 1, L), jnp.float32),
        jax.ShapeDtypeStruct((B, 1, H), jnp.float32),
        jax.ShapeDtypeStruct((B, 1, H), jnp.float32),
    )
    a_v, masked_a_q, v, q = pl.pallas_call(
        kernel,
        out_shape=out_shapes,
        grid_spec=grid_spec,
        compiler_params=pltpu.CompilerParams(
            dimension_semantics=("parallel",),
            vmem_limit_bytes=vmem_limit_bytes,
        ),
    )(lens, V, Q, W_b, W_v, W_q, w_hv, w_hq)

    # PyTorch output shapes: (B,1,R), (B,1,L), (B,H), (B,H).
    return a_v, masked_a_q, v.reshape(B, H), q.reshape(B, H)


# ---------------- pure-JAX reference (mirrors the PyTorch code) ----------------
def ref_forward(V, Q, Q_lengths, W_b, W_v, W_q, w_hv, w_hq):
    C = jnp.matmul(Q, jnp.matmul(W_b, V))                                    # (B,L,R)
    WqQt = jnp.matmul(W_q, jnp.transpose(Q, (0, 2, 1)))                      # (B,K,L)
    WvV = jnp.matmul(W_v, V)                                                 # (B,K,R)
    H_v = jnp.tanh(WvV + jnp.matmul(WqQt, C))                                # (B,K,R)
    H_q = jnp.tanh(WqQt + jnp.matmul(WvV, jnp.transpose(C, (0, 2, 1))))      # (B,K,L)
    a_v = jax.nn.softmax(jnp.matmul(w_hv.T, H_v), axis=2)                    # (B,1,R)
    a_q = jax.nn.softmax(jnp.matmul(w_hq.T, H_q), axis=2)                    # (B,1,L)
    B, _, L = a_q.shape
    mask = jnp.arange(L)[None, :] < Q_lengths[:, None]
    scores = jnp.where(mask, a_q[:, 0, :], -jnp.inf)
    masked_a_q = jax.nn.softmax(scores, axis=-1)[:, None, :]                 # (B,1,L)
    v = jnp.squeeze(jnp.matmul(a_v, jnp.transpose(V, (0, 2, 1))))            # (B,H)
    q = jnp.squeeze(jnp.matmul(masked_a_q, Q))                               # (B,H)
    return a_v, masked_a_q, v, q


def xavier_uniform(key, shape, gain):
    fan_in, fan_out = shape[1], shape[0]
    bound = gain * np.sqrt(6.0 / (fan_in + fan_out))
    return jax.random.uniform(key, shape, jnp.float32, -bound, bound)


if __name__ == "__main__":
    B, H, R, L, K = 2, 32, 16, 8, 16   # batch, hidden_dim, region_num, seq_len, co_attention_dim
    gain = float(np.sqrt(2.0))          # calculate_gain('relu')

    key = jax.random.PRNGKey(0)
    ks = jax.random.split(key, 8)
    W_b = xavier_uniform(ks[0], (H, H), gain)
    W_v = xavier_uniform(ks[1], (K, H), gain)
    W_q = xavier_uniform(ks[2], (K, H), gain)
    w_hv = xavier_uniform(ks[3], (K, 1), gain)
    w_hq = xavier_uniform(ks[4], (K, 1), gain)

    V = jax.random.normal(ks[5], (B, H, R), jnp.float32)
    Q = jax.random.normal(ks[6], (B, L, H), jnp.float32)
    Q_lengths = jnp.array([L, L - 3], dtype=jnp.int32)   # max length == L (as assumed by torch code)

    outs = parallel_co_attention(V, Q, Q_lengths, W_b, W_v, W_q, w_hv, w_hq)
    outs = jax.block_until_ready(outs)

    refs = ref_forward(V, Q, Q_lengths, W_b, W_v, W_q, w_hv, w_hq)
    for o, r in zip(outs, refs):
        np.testing.assert_allclose(np.asarray(o), np.asarray(r), rtol=1e-4, atol=1e-4)

    print("KERNEL_OK")
</pallas_src>

<mosaic_0001>
module attributes {stable_mosaic.version = 11 : i64} {
  func.func @coattn_kernel(%arg0: i32, %arg1: memref<2xi32, #tpu.memory_space<smem>>, %arg2: memref<2x32x16xf32, #tpu.memory_space<vmem>>, %arg3: memref<2x8x32xf32, #tpu.memory_space<vmem>>, %arg4: memref<32x32xf32, #tpu.memory_space<vmem>>, %arg5: memref<16x32xf32, #tpu.memory_space<vmem>>, %arg6: memref<16x32xf32, #tpu.memory_space<vmem>>, %arg7: memref<16x1xf32, #tpu.memory_space<vmem>>, %arg8: memref<16x1xf32, #tpu.memory_space<vmem>>, %arg9: memref<2x1x16xf32, #tpu.memory_space<vmem>>, %arg10: memref<2x1x8xf32, #tpu.memory_space<vmem>>, %arg11: memref<2x1x32xf32, #tpu.memory_space<vmem>>, %arg12: memref<2x1x32xf32, #tpu.memory_space<vmem>>) attributes {dimension_semantics = [#tpu.dimension_semantics<parallel>], iteration_bounds = array<i64: 1>, scalar_prefetch = 1 : i64, scratch_operands = 0 : i64, tpu.core_type = #tpu.core_type<tc>, window_params = [{transform_indices = @transform_0, window_bounds = array<i64: 2, 32, 16>}, {transform_indices = @transform_1, window_bounds = array<i64: 2, 8, 32>}, {pipeline_mode = #tpu.pipeline_mode<synchronous>, transform_indices = @transform_2, window_bounds = array<i64: 32, 32>}, {pipeline_mode = #tpu.pipeline_mode<synchronous>, transform_indices = @transform_3, window_bounds = array<i64: 16, 32>}, {pipeline_mode = #tpu.pipeline_mode<synchronous>, transform_indices = @transform_4, window_bounds = array<i64: 16, 32>}, {pipeline_mode = #tpu.pipeline_mode<synchronous>, transform_indices = @transform_5, window_bounds = array<i64: 16, 1>}, {pipeline_mode = #tpu.pipeline_mode<synchronous>, transform_indices = @transform_6, window_bounds = array<i64: 16, 1>}, {transform_indices = @transform_7, window_bounds = array<i64: 2, 1, 16>}, {transform_indices = @transform_8, window_bounds = array<i64: 2, 1, 8>}, {transform_indices = @transform_9, window_bounds = array<i64: 2, 1, 32>}, {transform_indices = @transform_10, window_bounds = array<i64: 2, 1, 32>}]} {
    %c0 = arith.constant 0 : index
    %c0_0 = arith.constant 0 : index
    %0 = vector.load %arg4[%c0, %c0_0] : memref<32x32xf32, #tpu.memory_space<vmem>>, vector<32x32xf32>
    %c0_1 = arith.constant 0 : index
    %c0_2 = arith.constant 0 : index
    %1 = vector.load %arg5[%c0_1, %c0_2] : memref<16x32xf32, #tpu.memory_space<vmem>>, vector<16x32xf32>
    %c0_3 = arith.constant 0 : index
    %c0_4 = arith.constant 0 : index
    %2 = vector.load %arg6[%c0_3, %c0_4] : memref<16x32xf32, #tpu.memory_space<vmem>>, vector<16x32xf32>
    %c0_5 = arith.constant 0 : index
    %c0_6 = arith.constant 0 : index
    %3 = vector.load %arg7[%c0_5, %c0_6] : memref<16x1xf32, #tpu.memory_space<vmem>>, vector<16x1xf32>
    %4 = vector.shape_cast %3 : vector<16x1xf32> to vector<16x1xf32>
    %5 = vector.broadcast %4 : vector<16x1xf32> to vector<16x16xf32>
    %c0_7 = arith.constant 0 : index
    %c0_8 = arith.constant 0 : index
    %6 = vector.load %arg8[%c0_7, %c0_8] : memref<16x1xf32, #tpu.memory_space<vmem>>, vector<16x1xf32>
    %7 = vector.shape_cast %6 : vector<16x1xf32> to vector<16x1xf32>
    %8 = vector.broadcast %7 : vector<16x1xf32> to vector<16x8xf32>
    %9 = tpu.iota {dimensions = array<i32: 1>} : vector<1x8xi32>
    %c2_i32 = arith.constant 2 : i32
    %10 = arith.muli %arg0, %c2_i32 : i32
    %c0_9 = arith.constant 0 : index
    %c0_10 = arith.constant 0 : index
    %c0_11 = arith.constant 0 : index
    %11 = vector.load %arg2[%c0_9, %c0_10, %c0_11] : memref<2x32x16xf32, #tpu.memory_space<vmem>>, vector<1x32x16xf32>
    %12 = vector.shape_cast %11 : vector<1x32x16xf32> to vector<32x16xf32>
    %c0_12 = arith.constant 0 : index
    %c0_13 = arith.constant 0 : index
    %c0_14 = arith.constant 0 : index
    %13 = vector.load %arg3[%c0_12, %c0_13, %c0_14] : memref<2x8x32xf32, #tpu.memory_space<vmem>>, vector<1x8x32xf32>
    %14 = vector.shape_cast %13 : vector<1x8x32xf32> to vector<8x32xf32>
    %cst = arith.constant dense<0.000000e+00> : vector<32x16xf32>
    %15 = tpu.matmul %0, %12, %cst {dimension_numbers = #tpu.dot_dimension_numbers<[1], [0], [0], [1], [0, 0, 1, 1], [], []>} : vector<32x32xf32>, vector<32x16xf32>, vector<32x16xf32> -> vector<32x16xf32>
    %cst_15 = arith.constant dense<0.000000e+00> : vector<16x16xf32>
    %16 = tpu.matmul %1, %12, %cst_15 {dimension_numbers = #tpu.dot_dimension_numbers<[1], [0], [0], [1], [0, 0, 1, 1], [], []>} : vector<16x32xf32>, vector<32x16xf32>, vector<16x16xf32> -> vector<16x16xf32>
    %cst_16 = arith.constant dense<0.000000e+00> : vector<16x8xf32>
    %17 = tpu.matmul %2, %14, %cst_16 {dimension_numbers = #tpu.dot_dimension_numbers<[1], [1], [0], [0], [0, 0, 1, 0], [], []>} : vector<16x32xf32>, vector<8x32xf32>, vector<16x8xf32> -> vector<16x8xf32>
    %cst_17 = arith.constant dense<0.000000e+00> : vector<8x16xf32>
    %18 = tpu.matmul %14, %15, %cst_17 {dimension_numbers = #tpu.dot_dimension_numbers<[1], [0], [0], [1], [0, 0, 1, 1], [], []>} : vector<8x32xf32>, vector<32x16xf32>, vector<8x16xf32> -> vector<8x16xf32>
    %cst_18 = arith.constant dense<0.000000e+00> : vector<16x16xf32>
    %19 = tpu.matmul %17, %18, %cst_18 {dimension_numbers = #tpu.dot_dimension_numbers<[1], [0], [0], [1], [0, 0, 1, 1], [], []>} : vector<16x8xf32>, vector<8x16xf32>, vector<16x16xf32> -> vector<16x16xf32>
    %20 = arith.addf %16, %19 : vector<16x16xf32>
    %21 = math.tanh %20 : vector<16x16xf32>
    %cst_19 = arith.constant dense<0.000000e+00> : vector<16x8xf32>
    %22 = tpu.matmul %16, %18, %cst_19 {dimension_numbers = #tpu.dot_dimension_numbers<[1], [1], [0], [0], [0, 0, 1, 0], [], []>} : vector<16x16xf32>, vector<8x16xf32>, vector<16x8xf32> -> vector<16x8xf32>
    %23 = arith.addf %17, %22 : vector<16x8xf32>
    %24 = math.tanh %23 : vector<16x8xf32>
    %25 = arith.mulf %5, %21 : vector<16x16xf32>
    %cst_20 = arith.constant dense<0.000000e+00> : vector<16xf32>
    %26 = vector.multi_reduction <add>, %25, %cst_20 [0] : vector<16x16xf32> to vector<16xf32>
    %27 = vector.shape_cast %26 : vector<16xf32> to vector<1x16xf32>
    %cst_21 = arith.constant dense<0xFF800000> : vector<1xf32>
    %28 = vector.multi_reduction <maximumf>, %27, %cst_21 [1] : vector<1x16xf32> to vector<1xf32>
    %29 = vector.shape_cast %28 : vector<1xf32> to vector<1x1xf32>
    %30 = vector.broadcast %29 : vector<1x1xf32> to vector<1x16xf32>
    %31 = arith.subf %27, %30 : vector<1x16xf32>
    %32 = math.exp %31 : vector<1x16xf32>
    %cst_22 = arith.constant dense<0.000000e+00> : vector<1xf32>
    %33 = vector.multi_reduction <add>, %32, %cst_22 [1] : vector<1x16xf32> to vector<1xf32>
    %34 = vector.shape_cast %33 : vector<1xf32> to vector<1x1xf32>
    %35 = vector.broadcast %34 : vector<1x1xf32> to vector<1x16xf32>
    %36 = arith.divf %32, %35 : vector<1x16xf32>
    %37 = arith.mulf %8, %24 : vector<16x8xf32>
    %cst_23 = arith.constant dense<0.000000e+00> : vector<8xf32>
    %38 = vector.multi_reduction <add>, %37, %cst_23 [0] : vector<16x8xf32> to vector<8xf32>
    %39 = vector.shape_cast %38 : vector<8xf32> to vector<1x8xf32>
    %cst_24 = arith.constant dense<0xFF800000> : vector<1xf32>
    %40 = vector.multi_reduction <maximumf>, %39, %cst_24 [1] : vector<1x8xf32> to vector<1xf32>
    %41 = vector.shape_cast %40 : vector<1xf32> to vector<1x1xf32>
    %42 = vector.broadcast %41 : vector<1x1xf32> to vector<1x8xf32>
    %43 = arith.subf %39, %42 : vector<1x8xf32>
    %44 = math.exp %43 : vector<1x8xf32>
    %cst_25 = arith.constant dense<0.000000e+00> : vector<1xf32>
    %45 = vector.multi_reduction <add>, %44, %cst_25 [1] : vector<1x8xf32> to vector<1xf32>
    %46 = vector.shape_cast %45 : vector<1xf32> to vector<1x1xf32>
    %47 = vector.broadcast %46 : vector<1x1xf32> to vector<1x8xf32>
    %48 = arith.divf %44, %47 : vector<1x8xf32>
    %c0_i32 = arith.constant 0 : i32
    %49 = arith.addi %10, %c0_i32 : i32
    %50 = arith.index_cast %49 : i32 to index
    %51 = memref.load %arg1[%50] : memref<2xi32, #tpu.memory_space<smem>>
    %52 = vector.broadcast %51 : i32 to vector<1x8xi32>
    %53 = arith.cmpi slt, %9, %52 : vector<1x8xi32>
    %cst_26 = arith.constant 0xFF800000 : f32
    %54 = vector.broadcast %cst_26 : f32 to vector<1x8xf32>
    %55 = arith.select %53, %48, %54 : vector<1x8xi1>, vector<1x8xf32>
    %cst_27 = arith.constant dense<0xFF800000> : vector<1xf32>
    %56 = vector.multi_reduction <maximumf>, %55, %cst_27 [1] : vector<1x8xf32> to vector<1xf32>
    %57 = vector.shape_cast %56 : vector<1xf32> to vector<1x1xf32>
    %58 = vector.broadcast %57 : vector<1x1xf32> to vector<1x8xf32>
    %59 = arith.subf %55, %58 : vector<1x8xf32>
    %60 = math.exp %59 : vector<1x8xf32>
    %cst_28 = arith.constant dense<0.000000e+00> : vector<1xf32>
    %61 = vector.multi_reduction <add>, %60, %cst_28 [1] : vector<1x8xf32> to vector<1xf32>
    %62 = vector.shape_cast %61 : vector<1xf32> to vector<1x1xf32>
    %63 = vector.broadcast %62 : vector<1x1xf32> to vector<1x8xf32>
    %64 = arith.divf %60, %63 : vector<1x8xf32>
    %cst_29 = arith.constant dense<0.000000e+00> : vector<1x32xf32>
    %65 = tpu.matmul %36, %12, %cst_29 {dimension_numbers = #tpu.dot_dimension_numbers<[1], [1], [0], [0], [0, 0, 1, 0], [], []>} : vector<1x16xf32>, vector<32x16xf32>, vector<1x32xf32> -> vector<1x32xf32>
    %cst_30 = arith.constant dense<0.000000e+00> : vector<1x32xf32>
    %66 = tpu.matmul %64, %14, %cst_30 {dimension_numbers = #tpu.dot_dimension_numbers<[1], [0], [0], [1], [0, 0, 1, 1], [], []>} : vector<1x8xf32>, vector<8x32xf32>, vector<1x32xf32> -> vector<1x32xf32>
    %67 = vector.shape_cast %36 : vector<1x16xf32> to vector<1x1x16xf32>
    %68 = vector.shape_cast %64 : vector<1x8xf32> to vector<1x1x8xf32>
    %69 = vector.shape_cast %65 : vector<1x32xf32> to vector<1x1x32xf32>
    %70 = vector.shape_cast %66 : vector<1x32xf32> to vector<1x1x32xf32>
    %c1 = arith.constant 1 : index
    %c0_31 = arith.constant 0 : index
    %c0_32 = arith.constant 0 : index
    %71 = vector.load %arg2[%c1, %c0_31, %c0_32] : memref<2x32x16xf32, #tpu.memory_space<vmem>>, vector<1x32x16xf32>
    %72 = vector.shape_cast %71 : vector<1x32x16xf32> to vector<32x16xf32>
    %c1_33 = arith.constant 1 : index
    %c0_34 = arith.constant 0 : index
    %c0_35 = arith.constant 0 : index
    %73 = vector.load %arg3[%c1_33, %c0_34, %c0_35] : memref<2x8x32xf32, #tpu.memory_space<vmem>>, vector<1x8x32xf32>
    %74 = vector.shape_cast %73 : vector<1x8x32xf32> to vector<8x32xf32>
    %cst_36 = arith.constant dense<0.000000e+00> : vector<32x16xf32>
    %75 = tpu.matmul %0, %72, %cst_36 {dimension_numbers = #tpu.dot_dimension_numbers<[1], [0], [0], [1], [0, 0, 1, 1], [], []>} : vector<32x32xf32>, vector<32x16xf32>, vector<32x16xf32> -> vector<32x16xf32>
    %cst_37 = arith.constant dense<0.000000e+00> : vector<16x16xf32>
    %76 = tpu.matmul %1, %72, %cst_37 {dimension_numbers = #tpu.dot_dimension_numbers<[1], [0], [0], [1], [0, 0, 1, 1], [], []>} : vector<16x32xf32>, vector<32x16xf32>, vector<16x16xf32> -> vector<16x16xf32>
    %cst_38 = arith.constant dense<0.000000e+00> : vector<16x8xf32>
    %77 = tpu.matmul %2, %74, %cst_38 {dimension_numbers = #tpu.dot_dimension_numbers<[1], [1], [0], [0], [0, 0, 1, 0], [], []>} : vector<16x32xf32>, vector<8x32xf32>, vector<16x8xf32> -> vector<16x8xf32>
    %cst_39 = arith.constant dense<0.000000e+00> : vector<8x16xf32>
    %78 = tpu.matmul %74, %75, %cst_39 {dimension_numbers = #tpu.dot_dimension_numbers<[1], [0], [0], [1], [0, 0, 1, 1], [], []>} : vector<8x32xf32>, vector<32x16xf32>, vector<8x16xf32> -> vector<8x16xf32>
    %cst_40 = arith.constant dense<0.000000e+00> : vector<16x16xf32>
    %79 = tpu.matmul %77, %78, %cst_40 {dimension_numbers = #tpu.dot_dimension_numbers<[1], [0], [0], [1], [0, 0, 1, 1], [], []>} : vector<16x8xf32>, vector<8x16xf32>, vector<16x16xf32> -> vector<16x16xf32>
    %80 = arith.addf %76, %79 : vector<16x16xf32>
    %81 = math.tanh %80 : vector<16x16xf32>
    %cst_41 = arith.constant dense<0.000000e+00> : vector<16x8xf32>
    %82 = tpu.matmul %76, %78, %cst_41 {dimension_numbers = #tpu.dot_dimension_numbers<[1], [1], [0], [0], [0, 0, 1, 0], [], []>} : vector<16x16xf32>, vector<8x16xf32>, vector<16x8xf32> -> vector<16x8xf32>
    %83 = arith.addf %77, %82 : vector<16x8xf32>
    %84 = math.tanh %83 : vector<16x8xf32>
    %85 = arith.mulf %5, %81 : vector<16x16xf32>
    %cst_42 = arith.constant dense<0.000000e+00> : vector<16xf32>
    %86 = vector.multi_reduction <add>, %85, %cst_42 [0] : vector<16x16xf32> to vector<16xf32>
    %87 = vector.shape_cast %86 : vector<16xf32> to vector<1x16xf32>
    %cst_43 = arith.constant dense<0xFF800000> : vector<1xf32>
    %88 = vector.multi_reduction <maximumf>, %87, %cst_43 [1] : vector<1x16xf32> to vector<1xf32>
    %89 = vector.shape_cast %88 : vector<1xf32> to vector<1x1xf32>
    %90 = vector.broadcast %89 : vector<1x1xf32> to vector<1x16xf32>
    %91 = arith.subf %87, %90 : vector<1x16xf32>
    %92 = math.exp %91 : vector<1x16xf32>
    %cst_44 = arith.constant dense<0.000000e+00> : vector<1xf32>
    %93 = vector.multi_reduction <add>, %92, %cst_44 [1] : vector<1x16xf32> to vector<1xf32>
    %94 = vector.shape_cast %93 : vector<1xf32> to vector<1x1xf32>
    %95 = vector.broadcast %94 : vector<1x1xf32> to vector<1x16xf32>
    %96 = arith.divf %92, %95 : vector<1x16xf32>
    %97 = arith.mulf %8, %84 : vector<16x8xf32>
    %cst_45 = arith.constant dense<0.000000e+00> : vector<8xf32>
    %98 = vector.multi_reduction <add>, %97, %cst_45 [0] : vector<16x8xf32> to vector<8xf32>
    %99 = vector.shape_cast %98 : vector<8xf32> to vector<1x8xf32>
    %cst_46 = arith.constant dense<0xFF800000> : vector<1xf32>
    %100 = vector.multi_reduction <maximumf>, %99, %cst_46 [1] : vector<1x8xf32> to vector<1xf32>
    %101 = vector.shape_cast %100 : vector<1xf32> to vector<1x1xf32>
    %102 = vector.broadcast %101 : vector<1x1xf32> to vector<1x8xf32>
    %103 = arith.subf %99, %102 : vector<1x8xf32>
    %104 = math.exp %103 : vector<1x8xf32>
    %cst_47 = arith.constant dense<0.000000e+00> : vector<1xf32>
    %105 = vector.multi_reduction <add>, %104, %cst_47 [1] : vector<1x8xf32> to vector<1xf32>
    %106 = vector.shape_cast %105 : vector<1xf32> to vector<1x1xf32>
    %107 = vector.broadcast %106 : vector<1x1xf32> to vector<1x8xf32>
    %108 = arith.divf %104, %107 : vector<1x8xf32>
    %c1_i32 = arith.constant 1 : i32
    %109 = arith.addi %10, %c1_i32 : i32
    %110 = arith.index_cast %109 : i32 to index
    %111 = memref.load %arg1[%110] : memref<2xi32, #tpu.memory_space<smem>>
    %112 = vector.broadcast %111 : i32 to vector<1x8xi32>
    %113 = arith.cmpi slt, %9, %112 : vector<1x8xi32>
    %cst_48 = arith.constant 0xFF800000 : f32
    %114 = vector.broadcast %cst_48 : f32 to vector<1x8xf32>
    %115 = arith.select %113, %108, %114 : vector<1x8xi1>, vector<1x8xf32>
    %cst_49 = arith.constant dense<0xFF800000> : vector<1xf32>
    %116 = vector.multi_reduction <maximumf>, %115, %cst_49 [1] : vector<1x8xf32> to vector<1xf32>
    %117 = vector.shape_cast %116 : vector<1xf32> to vector<1x1xf32>
    %118 = vector.broadcast %117 : vector<1x1xf32> to vector<1x8xf32>
    %119 = arith.subf %115, %118 : vector<1x8xf32>
    %120 = math.exp %119 : vector<1x8xf32>
    %cst_50 = arith.constant dense<0.000000e+00> : vector<1xf32>
    %121 = vector.multi_reduction <add>, %120, %cst_50 [1] : vector<1x8xf32> to vector<1xf32>
    %122 = vector.shape_cast %121 : vector<1xf32> to vector<1x1xf32>
    %123 = vector.broadcast %122 : vector<1x1xf32> to vector<1x8xf32>
    %124 = arith.divf %120, %123 : vector<1x8xf32>
    %cst_51 = arith.constant dense<0.000000e+00> : vector<1x32xf32>
    %125 = tpu.matmul %96, %72, %cst_51 {dimension_numbers = #tpu.dot_dimension_numbers<[1], [1], [0], [0], [0, 0, 1, 0], [], []>} : vector<1x16xf32>, vector<32x16xf32>, vector<1x32xf32> -> vector<1x32xf32>
    %cst_52 = arith.constant dense<0.000000e+00> : vector<1x32xf32>
    %126 = tpu.matmul %124, %74, %cst_52 {dimension_numbers = #tpu.dot_dimension_numbers<[1], [0], [0], [1], [0, 0, 1, 1], [], []>} : vector<1x8xf32>, vector<8x32xf32>, vector<1x32xf32> -> vector<1x32xf32>
    %127 = vector.shape_cast %96 : vector<1x16xf32> to vector<1x1x16xf32>
    %128 = vector.shape_cast %124 : vector<1x8xf32> to vector<1x1x8xf32>
    %129 = vector.shape_cast %125 : vector<1x32xf32> to vector<1x1x32xf32>
    %130 = vector.shape_cast %126 : vector<1x32xf32> to vector<1x1x32xf32>
    %131 = tpu.concatenate %67, %127 in 0 : vector<1x1x16xf32>, vector<1x1x16xf32> -> vector<2x1x16xf32>
    %c0_53 = arith.constant 0 : index
    %c0_54 = arith.constant 0 : index
    %c0_55 = arith.constant 0 : index
    %132 = vector.load %arg9[%c0_53, %c0_54, %c0_55] : memref<2x1x16xf32, #tpu.memory_space<vmem>>, vector<2x1x16xf32>
    tpu.vector_store %arg9[%c0_53, %c0_54, %c0_55], %131 {strides = array<i32>} : memref<2x1x16xf32, #tpu.memory_space<vmem>>, vector<2x1x16xf32>,
    %133 = tpu.concatenate %68, %128 in 0 : vector<1x1x8xf32>, vector<1x1x8xf32> -> vector<2x1x8xf32>
    %c0_56 = arith.constant 0 : index
    %c0_57 = arith.constant 0 : index
    %c0_58 = arith.constant 0 : index
    %134 = vector.load %arg10[%c0_56, %c0_57, %c0_58] : memref<2x1x8xf32, #tpu.memory_space<vmem>>, vector<2x1x8xf32>
    tpu.vector_store %arg10[%c0_56, %c0_57, %c0_58], %133 {strides = array<i32>} : memref<2x1x8xf32, #tpu.memory_space<vmem>>, vector<2x1x8xf32>,
    %135 = tpu.concatenate %69, %129 in 0 : vector<1x1x32xf32>, vector<1x1x32xf32> -> vector<2x1x32xf32>
    %c0_59 = arith.constant 0 : index
    %c0_60 = arith.constant 0 : index
    %c0_61 = arith.constant 0 : index
    %136 = vector.load %arg11[%c0_59, %c0_60, %c0_61] : memref<2x1x32xf32, #tpu.memory_space<vmem>>, vector<2x1x32xf32>
    tpu.vector_store %arg11[%c0_59, %c0_60, %c0_61], %135 {strides = array<i32>} : memref<2x1x32xf32, #tpu.memory_space<vmem>>, vector<2x1x32xf32>,
    %137 = tpu.concatenate %70, %130 in 0 : vector<1x1x32xf32>, vector<1x1x32xf32> -> vector<2x1x32xf32>
    %c0_62 = arith.constant 0 : index
    %c0_63 = arith.constant 0 : index
    %c0_64 = arith.constant 0 : index
    %138 = vector.load %arg12[%c0_62, %c0_63, %c0_64] : memref<2x1x32xf32, #tpu.memory_space<vmem>>, vector<2x1x32xf32>
    tpu.vector_store %arg12[%c0_62, %c0_63, %c0_64], %137 {strides = array<i32>} : memref<2x1x32xf32, #tpu.memory_space<vmem>>, vector<2x1x32xf32>,
    return
  }
  func.func @transform_0(%arg0: i32, %arg1: memref<2xi32, #tpu.memory_space<smem>>) -> (i32, i32, i32) {
    %c0_i32 = arith.constant 0 : i32
    %c0_i32_0 = arith.constant 0 : i32
    %c0_i32_1 = arith.constant 0 : i32
    return %arg0, %c0_i32, %c0_i32_0 : i32, i32, i32
  }
  func.func @transform_1(%arg0: i32, %arg1: memref<2xi32, #tpu.memory_space<smem>>) -> (i32, i32, i32) {
    %c0_i32 = arith.constant 0 : i32
    %c0_i32_0 = arith.constant 0 : i32
    %c0_i32_1 = arith.constant 0 : i32
    return %arg0, %c0_i32, %c0_i32_0 : i32, i32, i32
  }
  func.func @transform_2(%arg0: i32, %arg1: memref<2xi32, #tpu.memory_space<smem>>) -> (i32, i32) {
    %c0_i32 = arith.constant 0 : i32
    %c0_i32_0 = arith.constant 0 : i32
    %c0_i32_1 = arith.constant 0 : i32
    return %c0_i32, %c0_i32_0 : i32, i32
  }
  func.func @transform_3(%arg0: i32, %arg1: memref<2xi32, #tpu.memory_space<smem>>) -> (i32, i32) {
    %c0_i32 = arith.constant 0 : i32
    %c0_i32_0 = arith.constant 0 : i32
    %c0_i32_1 = arith.constant 0 : i32
    return %c0_i32, %c0_i32_0 : i32, i32
  }
  func.func @transform_4(%arg0: i32, %arg1: memref<2xi32, #tpu.memory_space<smem>>) -> (i32, i32) {
    %c0_i32 = arith.constant 0 : i32
    %c0_i32_0 = arith.constant 0 : i32
    %c0_i32_1 = arith.constant 0 : i32
    return %c0_i32, %c0_i32_0 : i32, i32
  }
  func.func @transform_5(%arg0: i32, %arg1: memref<2xi32, #tpu.memory_space<smem>>) -> (i32, i32) {
    %c0_i32 = arith.constant 0 : i32
    %c0_i32_0 = arith.constant 0 : i32
    %c0_i32_1 = arith.constant 0 : i32
    return %c0_i32, %c0_i32_0 : i32, i32
  }
  func.func @transform_6(%arg0: i32, %arg1: memref<2xi32, #tpu.memory_space<smem>>) -> (i32, i32) {
    %c0_i32 = arith.constant 0 : i32
    %c0_i32_0 = arith.constant 0 : i32
    %c0_i32_1 = arith.constant 0 : i32
    return %c0_i32, %c0_i32_0 : i32, i32
  }
  func.func @transform_7(%arg0: i32, %arg1: memref<2xi32, #tpu.memory_space<smem>>) -> (i32, i32, i32) {
    %c0_i32 = arith.constant 0 : i32
    %c0_i32_0 = arith.constant 0 : i32
    %c0_i32_1 = arith.constant 0 : i32
    return %arg0, %c0_i32, %c0_i32_0 : i32, i32, i32
  }
  func.func @transform_8(%arg0: i32, %arg1: memref<2xi32, #tpu.memory_space<smem>>) -> (i32, i32, i32) {
    %c0_i32 = arith.constant 0 : i32
    %c0_i32_0 = arith.constant 0 : i32
    %c0_i32_1 = arith.constant 0 : i32
    return %arg0, %c0_i32, %c0_i32_0 : i32, i32, i32
  }
  func.func @transform_9(%arg0: i32, %arg1: memref<2xi32, #tpu.memory_space<smem>>) -> (i32, i32, i32) {
    %c0_i32 = arith.constant 0 : i32
    %c0_i32_0 = arith.constant 0 : i32
    %c0_i32_1 = arith.constant 0 : i32
    return %arg0, %c0_i32, %c0_i32_0 : i32, i32, i32
  }
  func.func @transform_10(%arg0: i32, %arg1: memref<2xi32, #tpu.memory_space<smem>>) -> (i32, i32, i32) {
    %c0_i32 = arith.constant 0 : i32
    %c0_i32_0 = arith.constant 0 : i32
    %c0_i32_1 = arith.constant 0 : i32
    return %arg0, %c0_i32, %c0_i32_0 : i32, i32, i32
  }
}

</mosaic_0001>

<bundles_post_ra>
// kernel: tpu_custom_call.1
= control target key start
LH: loop header
LB: loop body
LE: loop exit
PB: predicated region body
PF: predicated region fallthrough
CT: control target
= control target key end

     0   :  { %s2440_s0 = inlined_call_operand.vmem [shape: s32[2], index: 0, kind: input, shape index: {}]   ;;  %s2441_s1 = inlined_call_operand.vmem [shape: f32[2,32,16], index: 1, kind: input, shape index: {}]   ;;  %s2442_s2 = inlined_call_operand.vmem [shape: f32[2,8,32], index: 2, kind: input, shape index: {}]   ;;  %s2443_s3 = inlined_call_operand.vmem [shape: f32[32,32], index: 3, kind: input, shape index: {}]   ;;  %s2444_s4 = inlined_call_operand.vmem [shape: f32[16,32], index: 4, kind: input, shape index: {}]   ;;  %s2445_s5 = inlined_call_operand.vmem [shape: f32[16,32], index: 5, kind: input, shape index: {}]   ;;  %s2446_s6 = inlined_call_operand.vmem [shape: f32[16,1], index: 6, kind: input, shape index: {}]   ;;  %s2447_s7 = inlined_call_operand.vmem [shape: f32[16,1], index: 7, kind: input, shape index: {}]   ;;  %s2448_s8 = inlined_call_operand.hbm [shape: f32[2,1,16], index: 8, kind: output, shape index: {0}]   ;;  %s2449_s9 = inlined_call_operand.hbm [shape: f32[2,1,8], index: 9, kind: output, shape index: {1}]   ;;  %s2450_s10 = inlined_call_operand.hbm [shape: f32[2,1,32], index: 10, kind: output, shape index: {2}]   ;;  %s2451_s11 = inlined_call_operand.hbm [shape: f32[2,1,32], index: 11, kind: output, shape index: {3}]  }
   0x1   :  { %s17_s19 = sshll.u32 %s2440_s0, 4  ;;  %s18_s19 = int_to_ptr.vmem [resolvable:$true] %s17_s19 }
   0x2   :  { %s1950_s20 = scalar_lea.vmem %s18_s19, 16  ;;  %p1955_p1 = scmp.lt.s32.totalorder %s18_s19, %s18_s19 }
   0x3   :  { %p1951_p0 = scmp.ne.s32.totalorder %s18_s19, %s1950_s20  ;;  %p1956_p2 = scmp.lt.s32.totalorder %s1950_s20, %s1950_s20 }
   0x5   :  { %p1957_p3 = por %p1956_p2, %p1955_p1 }
   0x7   :  { %p1958_p4 = pnand %p1957_p3, %p1951_p0 }
   0x9   :  { %1961 = shalt.err (!%p1958_p4)  }
   0xa   :  { %s2058_s21 = smov [#allocation3]  }
   0xb   :  { %20 = dma.vmem_to_smem %s18_s19, 16, %s2058_s21, [#allocation2] }
   0xc   :  { %2050 = dma.done.wait [#allocation2], 16 }
   0xd   :  { %2051 = vsyncadd [#allocation2], 4294967280 }
   0xe   :  { %22 = sfence }
   0xf   :  { %23 = vsyncpa [#allocation5], 0 }
  0x10   :  { %24 = vsyncpa [#allocation7], 0  ;;  %v75_v0 = vld [vmem:[%s2441_s1] sm:$0xff]  ;;  %v76_v1 = vld [vmem:[%s2441_s1 + $0x8] sm:$0xff]  ;;  %vm80_vm0 = vcmask 261120  }
  0x11   :  { %v77_v2 = vld [vmem:[%s2441_s1 + $0x10] sm:$0xff]  ;;  %v2141_v3 = vpack.c.bf16 %v76_v1, %v75_v0  ;;  %v78_v4 = vld [vmem:[%s2441_s1 + $0x18] sm:$0xff]  ;;  %v2149_v5 = vld [vmem:[%s2443_s3] sm:$0xff] }
  0x12   :  { %v2151_v6 = vpack.c.bf16 %v78_v4, %v77_v2  ;;  %1711 = vmatprep.mubr.msk.f32.mxu0 %vm80_vm0, %v2149_v5 }
  0x13   :  { %25 = vsyncpa [#allocation10], 0  ;;  %1838 = vmatprep.subr.bf16.mxu0 %v2141_v3  ;;  %1846 = vmatprep.subr.bf16.mxu1 %v2141_v3  ;;  %v2165_v7 = vld [vmem:[%s2443_s3 + $0x8] sm:$0xff]  ;;  %v2171_v8 = vld [vmem:[%s2443_s3 + $0x10] sm:$0xff]  ;;  %v2059_v10 = vmov 0.0|0.0   ;;  %vm2060_vm1 = vmmov 0   ;;  %v72_v62 = vlaneseq }
  0x14   :  { %1840 = vmatpush3.bf16.msra.mxu0 %v2141_v3  ;;  %1848 = vmatpush3.bf16.msra.mxu1 %v2141_v3  ;;  %v2180_v9 = vld [vmem:[%s2443_s3 + $0x18] sm:$0xff]  ;;  %v2188_v11 = vld [vmem:[%s2444_s4] sm:$0xff]  ;;  %v2195_v12 = vld [vmem:[%s2444_s4 + $0x8] sm:$0xff]  ;;  %v2061_v16 = vmov 0.0   ;;  %vm413_vm2 = vcmask 64512   ;;  %v2062_v28 = vmov 0  }
  0x15   :  { %1842 = vmatprep.subr.bf16.mxu0 %v2151_v6  ;;  %1850 = vmatprep.subr.bf16.mxu1 %v2151_v6  ;;  %v79_v13 = vld [vmem:[%s2442_s2] sm:$0xff]  ;;  %v2212_v15 = vld [vmem:[%s2445_s5 + $0x8] sm:$0xff]  ;;  %vm499_vm3 = vcmask 130048   ;;  %v2250_v63 = vand.u32 127, %v72_v62  ;;  %vm1514_vm5 = vcmask 57344   ;;  %vm1517_vm7 = vcmask 253952  }
  0x16   :  { %1725 = vmatprep.mubr.msk.f32.mxu1 %vm80_vm0, %v2188_v11  ;;  %v2207_v14 = vld [vmem:[%s2445_s5] sm:$0xff]  ;;  %1908 = vset.pattern.permute.xlu0 %v2062_v28  ;;  %v61_v29 = vld [vmem:[%s2447_s7 + $0x8] sm:$0xff]  ;;  %vm2310_vm6 = vmpackc.low %vm499_vm3, %vm499_vm3  ;;  %vm1511_vm8 = vcmask 122880   ;;  %s2063_s21 = smov [#allocation6]   ;;  %s2064_s22 = smov [#allocation4]  }
  0x17   :  { %v60_v27 = vld [vmem:[%s2447_s7] sm:$0xff]  ;;  %1909 = vset.pattern.permute.xlu1 %v2062_v28  ;;  %s632_s7 = sld [smem:[#allocation3]]  ;;  %s1539_s3 = sshll.u32 %s2063_s21, 4  ;;  %s1540_s3 = int_to_ptr.vmem [resolvable:$true] %s1539_s3 }
  0x18   :  { %1844 = vmatpush3.bf16.msra.mxu0 %v2151_v6  ;;  %1852 = vmatpush3.bf16.msra.mxu1 %v2151_v6  ;;  %s1527_s23 = sshll.u32 %s2064_s22, 4  ;;  %s1962_s0 = scalar_lea.vmem %s1540_s3, 32  ;;  %s1528_s23 = int_to_ptr.vmem [resolvable:$true] %s1527_s23 }
  0x19   :  { %1853 = vmatprep.subr.bf16.mxu0 %v2059_v10  ;;  %1728 = vmatprep.subr.msk.mxu1 %vm80_vm0, %v79_v13  ;;  %p1963_p5 = scmp.ne.s32.totalorder %s1540_s3, %s1962_s0  ;;  %p1967_p6 = scmp.lt.s32.totalorder %s1540_s3, %s1540_s3 }
  0x1a   :  { %64 = vperm.xlu0 %1908, %v60_v27   ;;  %p1968_p7 = scmp.lt.s32.totalorder %s1962_s0, %s1962_s0 }
  0x1b   :  { %1712 = vmatmul.mubr.msk.f32.vlgmr.msra.gmra.mrb[0].mxu0 %vm80_vm0, %v2165_v7  ;;  %1726 = vmatmul.mubr.msk.f32.vlgmr.msra.gmra.mrb[0].mxu1 %vm80_vm0, %v2195_v12 }
  0x1c   :  { %1714 = vmatprep.mubr.msk.f32.mxu0 %vm80_vm0, %v2171_v8  ;;  %1730 = vmatprep.mubr.msk.f32.mxu1 %vm80_vm0, %v2207_v14  ;;  %p1969_p8 = por %p1968_p7, %p1967_p6 }
  0x1d   :  { %v633_v0 = vstv %s632_s7 }
  0x1e   :  { %69 = vperm.xlu0 %1908, %v61_v29   ;;  %vm634_vm4 = vcmp.lt.s32.totalorder %v2250_v63, %v633_v0  ;;  %p1970_p9 = pnand %p1969_p8, %p1963_p5 }
  0x1f   :  { %1715 = vmatmul.mubr.msk.f32.gmra.mrb[2].mxu0 %vm80_vm0, %v2180_v9 }
  0x20   :  { %1741 = vmatprep.mubr.msk.f32.mxu0 %vm2060_vm1, %v2061_v16 }
  0x21   :  { %1729 = vmatpush3.xpose.msk.msra.mxu1 %vm80_vm0, %v79_v13 }
  0x22   :  { %1859 = vmatprep.subr.bf16.mxu1 %v2059_v10 }
  0x24   :  { %1731 = vmatmul.mubr.msk.f32.vlgmr.msra.gmra.mrb[2].mxu1 %vm80_vm0, %v2212_v15 }
  0x25   :  { %1762 = vmatprep.mubr.msk.f32.mxu1 %vm2060_vm1, %v2061_v16  ;;  %1862 = vmatpush3.bf16.xpose.msk.msra.mxu1 %vm2310_vm6, %v2141_v3 }
  0x26   :  { %1863 = vmatprep.subr.bf16.mxu1 %v2059_v10 }
  0x2d   :  { %1866 = vmatpush3.bf16.xpose.msk.msra.mxu1 %vm2310_vm6, %v2151_v6 }
  0x99   :  { %v2240_v40 = vpop.permute.xlu0 %64 }
  0x9d   :  { %v2242_v42 = vpop.permute.xlu0 %69 }
  0xee   :  { %v1713_v17 = vpop.f32.mrb[0].mxu0  ;;  %v1727_v23 = vpop.f32.mrb[0].mxu1 }
  0xef   :  { %v159_v18 = vpop.f32.mrb[1].mxu0  ;;  %v250_v24 = vpop.f32.mrb[1].mxu1 }
  0xf0   :  { %v1854_v19 = vpack.c.bf16 %v1713_v17, %v159_v18 }
  0xf2   :  { %v1716_v20 = vpop.f32.mrb[2].mxu0  ;;  %1855 = vmatpush3.bf16.msra.mxu0 %v1854_v19 }
  0xf3   :  { %v169_v21 = vpop.f32.mrb[3].mxu0  ;;  %1856 = vmatprep.subr.bf16.mxu0 %v2059_v10 }
  0xf4   :  { %v1857_v22 = vpack.c.bf16 %v1716_v20, %v169_v21 }
  0xf6   :  { %1858 = vmatpush3.bf16.msra.mxu0 %v1857_v22  ;;  %v48_v22 = vld [vmem:[%s2446_s6] sm:$0xff] }
  0xf7   :  { %v1732_v25 = vpop.f32.mrb[2].mxu1 }
  0xf8   :  { %v334_v26 = vpop.f32.mrb[3].mxu1 }
  0xf9   :  { %1742 = vmatmul.mubr.msk.f32.vlgmr.msra.gmra.mrb[4].mxu0 %vm80_vm0, %v79_v13 }
  0xfa   :  { %1746 = vmatprep.mubr.msk.f32.mxu0 %vm413_vm2, %v334_v26 }
 0x1cc   :  { %v409_v30 = vpop.f32.mrb[4].mxu0 }
 0x1cd   :  { %v1743_v31 = vpop.f32.mrb[5].mxu0  ;;  %1744 = vmatprep.subr.mxu0 %v409_v30 }
 0x1ce   :  { %1745 = vmatpush3.msra.mxu0 %v409_v30 }
 0x1cf   :  { %1747 = vmatmul.mubr.msk.f32.vlgmr.msra.gmra.mrb[6].mxu0 %vm413_vm2, %v1732_v25  ;;  %1749 = vmatprep.subr.msk.mxu0 %vm499_vm3, %v409_v30 }
 0x1d0   :  { %1751 = vmatprep.mubr.msk.f32.mxu0 %vm499_vm3, %v250_v24 }
 0x1d5   :  { %1750 = vmatpush3.xpose.msk.msra.mxu0 %vm499_vm3, %v409_v30 }
 0x1d6   :  { %1765 = vmatprep.subr.mxu0 %v2061_v16 }
 0x1d8   :  { %1752 = vmatmul.mubr.msk.f32.vlgmr.msra.gmra.mrb[8].mxu0 %vm499_vm3, %v1727_v23 }
 0x1d9   :  { %1766 = vmatpush3.msra.mxu0 %v79_v13  ;;  %1767 = vmatprep.mubr.msk.f32.mxu0 %vm2060_vm1, %v2061_v16 }
 0x2a2   :  { %v1748_v32 = vpop.f32.mrb[6].mxu0 }
 0x2a3   :  { %v496_v33 = vadd.f32 %v1748_v32, %v1727_v23  ;;  %v486_v34 = vpop.f32.mrb[7].mxu0  ;;  %v49_v23 = vld [vmem:[%s2446_s6 + $0x8] sm:$0xff] }
 0x2a4   :  { %v495_v35 = vadd.f32 %v486_v34, %v250_v24  ;;  %v1606_v24 = vld [vmem:[%s2441_s1 + $0x20] sm:$0xff] }
 0x2ab   :  { %v1753_v36 = vpop.f32.mrb[8].mxu0 }
 0x2ac   :  { %v585_v37 = vadd.f32 %v1753_v36, %v1732_v25  ;;  %v575_v38 = vpop.f32.mrb[9].mxu0  ;;  %v1607_v25 = vld [vmem:[%s2441_s1 + $0x28] sm:$0xff]  ;;  %v1608_v36 = vld [vmem:[%s2441_s1 + $0x30] sm:$0xff] }
 0x2ad   :  { %v584_v39 = vadd.f32 %v575_v38, %v334_v26  ;;  %v2267_v26 = vpack.c.bf16 %v1607_v25, %v1606_v24 }
 0x2ae   :  { %1910 = vtanh.f32 %v585_v37 }
 0x2af   :  { %1912 = vtanh.f32 %v584_v39  ;;  %1868 = vmatprep.subr.bf16.mxu0 %v2267_v26 }
 0x2b8   :  { %v1911_v41 = vpop.eup %1910 }
 0x2b9   :  { %v1913_v43 = vpop.eup %1912  ;;  %v611_v44 = vmul.f32 %v1911_v41, %v2242_v42 }
 0x2ba   :  { %v610_v45 = vmul.f32 %v1913_v43, %v2240_v40 }
 0x2bb   :  { %v613_v46 = vsel %vm413_vm2, %v611_v44, 0.0 }
 0x2bc   :  { %v612_v47 = vsel %vm413_vm2, %v610_v45, 0.0 }
 0x2bd   :  { %v614_v48 = vadd.f32 %v613_v46, %v612_v47 }
 0x2bf   :  { %v615_v49 = vrot.slane %v614_v48, 4 }
 0x2c1   :  { %v616_v50 = vadd.f32 %v615_v49, %v614_v48 }
 0x2c3   :  { %v617_v51 = vrot.slane %v616_v50, 2 }
 0x2c5   :  { %v618_v52 = vadd.f32 %v617_v51, %v616_v50  ;;  %v1610_v51 = vld [vmem:[%s2442_s2 + $0x8] sm:$0xff]  ;;  %s1626_s2 = sld [smem:[#allocation3 + $0x1]] }
 0x2c6   :  { %1795 = vmatprep.subr.msk.mxu1 %vm80_vm0, %v1610_v51 }
 0x2c7   :  { %v619_v53 = vrot.slane %v618_v52, 1 }
 0x2c9   :  { %v620_v54 = vadd.f32 %v619_v53, %v618_v52 }
 0x2cb   :  { %v621_v55 = vsel %vm413_vm2, %v620_v54, -inf }
 0x2cc   :  { %622 = vmax.xlane.f32.xlu1 %v621_v55 }
 0x359   :  { %v623_v56 = vpop.xlane.xlu1 %622 }
 0x35a   :  { %v624_v57 = vsub.f32 %v620_v54, %v623_v56 }
 0x35c   :  { %v625_v58 = vmul.f32 1.442695, %v624_v57 }
 0x35e   :  { %1914 = vpow2.f32 %v625_v58 }
 0x368   :  { %v1915_v59 = vpop.eup %1914 }
 0x369   :  { %v627_v60 = vsel %vm413_vm2, %v1915_v59, 0.0 }
 0x36a   :  { %628 = vadd.xlane.f32.xlu1 %v627_v60 }
 0x3f7   :  { %v629_v61 = vpop.xlane.xlu1 %628 }
 0x3f8   :  { %1916 = vrcp.f32 %v629_v61 }
 0x402   :  { %v1917_v1 = vpop.eup %1916 }
 0x403   :  { %v631_v2 = vmul.f32 %v1917_v1, %v1915_v59 }
 0x405   :  { %v635_v4 = vsel %vm634_vm4, %v631_v2, -inf }
 0x406   :  { %v636_v13 = vsel %vm413_vm2, %v635_v4, -inf }
 0x407   :  { %637 = vmax.xlane.f32.xlu0 %v636_v13 }
 0x494   :  { %v638_v17 = vpop.xlane.xlu0 %637 }
 0x495   :  { %v639_v18 = vsub.f32 %v635_v4, %v638_v17 }
 0x497   :  { %v640_v19 = vmul.f32 1.442695, %v639_v18 }
 0x499   :  { %1918 = vpow2.f32 %v640_v19 }
 0x49a   :  { %1920 = vtanh.f32 %v495_v35 }
 0x49b   :  { %1922 = vtanh.f32 %v496_v33  ;;  %v1609_v33 = vld [vmem:[%s2441_s1 + $0x38] sm:$0xff] }
 0x49c   :  { %v2284_v43 = vpack.c.bf16 %v1609_v33, %v1608_v36 }
 0x4a3   :  { %v1919_v20 = vpop.eup %1918 }
 0x4a4   :  { %v642_v21 = vsel %vm413_vm2, %v1919_v20, 0.0  ;;  %v1921_v29 = vpop.eup %1920 }
 0x4a5   :  { %643 = vadd.xlane.f32.xlu1 %v642_v21  ;;  %v1923_v31 = vpop.eup %1922 }
 0x4b6   :  { %52 = vperm.xlu1 %1909, %v48_v22  }
 0x4ba   :  { %57 = vperm.xlu1 %1909, %v49_v23  }
 0x532   :  { %v644_v27 = vpop.xlane.xlu1 %643 }
 0x533   :  { %1924 = vrcp.f32 %v644_v27 }
 0x536   :  { %v2270_v28 = vpop.permute.xlu1 %52 }
 0x537   :  { %v588_v30 = vmul.f32 %v1921_v29, %v2270_v28 }
 0x539   :  { %v590_v37 = vsel %vm499_vm3, %v588_v30, 0.0 }
 0x53a   :  { %v2273_v32 = vpop.permute.xlu1 %57 }
 0x53b   :  { %v589_v34 = vmul.f32 %v1923_v31, %v2273_v32 }
 0x53d   :  { %v1925_v35 = vpop.eup %1924  ;;  %v591_v38 = vsel %vm499_vm3, %v589_v34, 0.0 }
 0x53e   :  { %v646_v39 = vmul.f32 %v1925_v35, %v1919_v20  ;;  %v592_v41 = vadd.f32 %v591_v38, %v590_v37 }
 0x540   :  { %v593_v44 = vrot.slane %v592_v41, 4  ;;  %1768 = vmatmul.mubr.msk.f32.vlgmr.msra.gmra.mrb[10].mxu0 %vm413_vm2, %v646_v39  ;;  %1515 = vst.msk [vmem:[#allocation6] sm:$0x1] %vm1514_vm5, %v646_v39 }
 0x541   :  { %1870 = vmatpush3.bf16.msra.mxu0 %v2267_v26  ;;  %1778 = vmatprep.mubr.msk.f32.mxu0 %vm80_vm0, %v2149_v5 }
 0x542   :  { %v594_v45 = vadd.f32 %v593_v44, %v592_v41  ;;  %1872 = vmatprep.subr.bf16.mxu0 %v2284_v43 }
 0x544   :  { %v595_v46 = vrot.slane %v594_v45, 2 }
 0x545   :  { %1874 = vmatpush3.bf16.msra.mxu0 %v2284_v43 }
 0x546   :  { %v596_v47 = vadd.f32 %v595_v46, %v594_v45  ;;  %1876 = vmatprep.subr.bf16.mxu0 %v2267_v26 }
 0x548   :  { %v597_v48 = vrot.slane %v596_v47, 1  ;;  %1779 = vmatmul.mubr.msk.f32.vlgmr.msra.gmra.mrb[12].mxu0 %vm80_vm0, %v2165_v7 }
 0x549   :  { %1781 = vmatprep.mubr.msk.f32.mxu0 %vm80_vm0, %v2171_v8  ;;  %1878 = vmatpush3.bf16.msra.mxu0 %v2267_v26 }
 0x54a   :  { %v598_v49 = vadd.f32 %v597_v48, %v596_v47  ;;  %1880 = vmatprep.subr.bf16.mxu0 %v2284_v43 }
 0x54c   :  { %v599_v5 = vsel %vm499_vm3, %v598_v49, -inf  ;;  %1782 = vmatmul.mubr.msk.f32.gmra.mrb[14].mxu0 %vm80_vm0, %v2180_v9 }
 0x54d   :  { %600 = vmax.xlane.f32.xlu1 %v599_v5  ;;  %1882 = vmatpush3.bf16.msra.mxu0 %v2284_v43 }
 0x54e   :  { %1792 = vmatprep.mubr.msk.f32.mxu0 %vm80_vm0, %v2188_v11 }
 0x550   :  { %1793 = vmatmul.mubr.msk.f32.vlgmr.msra.gmra.mrb[16].mxu0 %vm80_vm0, %v2195_v12 }
 0x5da   :  { %v601_v8 = vpop.xlane.xlu1 %600 }
 0x5db   :  { %v602_v9 = vsub.f32 %v598_v49, %v601_v8 }
 0x5dd   :  { %v603_v11 = vmul.f32 1.442695, %v602_v9 }
 0x5df   :  { %1926 = vpow2.f32 %v603_v11 }
 0x5e9   :  { %v1927_v12 = vpop.eup %1926 }
 0x5ea   :  { %v605_v50 = vsel %vm499_vm3, %v1927_v12, 0.0 }
 0x5eb   :  { %606 = vadd.xlane.f32.xlu0 %v605_v50 }
 0x613   :  { %v801_v3 = vpop.f32.mrb[10].mxu0 }
 0x614   :  { %1520 = vst.msk [vmem:[#allocation9] sm:$0x1] %vm1517_vm7, %v801_v3  ;;  %v1769_v52 = vpop.f32.mrb[11].mxu0 }
 0x615   :  { %v1339_v52 = vstv %s1626_s2 }
 0x616   :  { %vm1340_vm9 = vcmp.lt.s32.totalorder %v2250_v63, %v1339_v52 }
 0x61b   :  { %v1780_v6 = vpop.f32.mrb[12].mxu0 }
 0x61c   :  { %v878_v53 = vpop.f32.mrb[13].mxu0 }
 0x61d   :  { %v1884_v54 = vpack.c.bf16 %v1780_v6, %v878_v53 }
 0x61f   :  { %v1783_v55 = vpop.f32.mrb[14].mxu0 }
 0x620   :  { %v888_v56 = vpop.f32.mrb[15].mxu0 }
 0x621   :  { %v1887_v57 = vpack.c.bf16 %v1783_v55, %v888_v56 }
 0x678   :  { %v607_v58 = vpop.xlane.xlu0 %606 }
 0x679   :  { %1928 = vrcp.f32 %v607_v58 }
 0x683   :  { %v1929_v59 = vpop.eup %1928 }
 0x684   :  { %v609_v60 = vmul.f32 %v1929_v59, %v1927_v12 }
 0x686   :  { %1763 = vmatmul.mubr.msk.f32.vlgmr.msra.gmra.mrb[4].mxu1 %vm499_vm3, %v609_v60  ;;  %1512 = vst.msk [vmem:[#allocation4] sm:$0x1] %vm1511_vm8, %v609_v60 }
 0x687   :  { %1796 = vmatpush3.xpose.msk.msra.mxu1 %vm80_vm0, %v1610_v51  ;;  %1797 = vmatprep.mubr.msk.f32.mxu1 %vm80_vm0, %v2207_v14  ;;  %v1794_v14 = vpop.f32.mrb[16].mxu0 }
 0x688   :  { %1883 = vmatprep.subr.bf16.mxu1 %v2059_v10 }
 0x68a   :  { %1798 = vmatmul.mubr.msk.f32.vlgmr.msra.gmra.mrb[6].mxu1 %vm80_vm0, %v2212_v15  ;;  %v963_v15 = vpop.f32.mrb[17].mxu0 }
 0x68b   :  { %1885 = vmatpush3.bf16.msra.mxu1 %v1884_v54  ;;  %1808 = vmatprep.mubr.msk.f32.mxu1 %vm2060_vm1, %v2061_v16 }
 0x68c   :  { %1886 = vmatprep.subr.bf16.mxu1 %v2059_v10 }
 0x68f   :  { %1888 = vmatpush3.bf16.msra.mxu1 %v1887_v57 }
 0x690   :  { %1889 = vmatprep.subr.bf16.mxu1 %v2059_v10 }
 0x692   :  { %1809 = vmatmul.mubr.msk.f32.vlgmr.msra.gmra.mrb[8].mxu1 %vm80_vm0, %v1610_v51 }
 0x693   :  { %1829 = vmatprep.mubr.msk.f32.mxu1 %vm2060_vm1, %v2061_v16 }
 0x698   :  { %1892 = vmatpush3.bf16.xpose.msk.msra.mxu1 %vm2310_vm6, %v2267_v26 }
 0x699   :  { %1893 = vmatprep.subr.bf16.mxu1 %v2059_v10 }
 0x6a0   :  { %1896 = vmatpush3.bf16.xpose.msk.msra.mxu1 %vm2310_vm6, %v2284_v43 }
 0x759   :  { %v728_v61 = vpop.f32.mrb[4].mxu1 }
 0x75a   :  { %1518 = vst.msk [vmem:[#allocation8] sm:$0x1] %vm1517_vm7, %v728_v61  ;;  %v1764_v62 = vpop.f32.mrb[5].mxu1 }
 0x75d   :  { %v1799_v0 = vpop.f32.mrb[6].mxu1 }
 0x75e   :  { %v1041_v1 = vpop.f32.mrb[7].mxu1 }
 0x75f   :  { %1813 = vmatprep.mubr.msk.f32.mxu0 %vm413_vm2, %v1041_v1 }
 0x765   :  { %v1116_v2 = vpop.f32.mrb[8].mxu1 }
 0x766   :  { %v1810_v4 = vpop.f32.mrb[9].mxu1  ;;  %1811 = vmatprep.subr.mxu0 %v1116_v2 }
 0x767   :  { %1812 = vmatpush3.msra.mxu0 %v1116_v2 }
 0x768   :  { %1814 = vmatmul.mubr.msk.f32.vlgmr.msra.gmra.mrb[18].mxu0 %vm413_vm2, %v1799_v0  ;;  %1816 = vmatprep.subr.msk.mxu0 %vm499_vm3, %v1116_v2 }
 0x769   :  { %1818 = vmatprep.mubr.msk.f32.mxu0 %vm499_vm3, %v963_v15 }
 0x76e   :  { %1817 = vmatpush3.xpose.msk.msra.mxu0 %vm499_vm3, %v1116_v2 }
 0x76f   :  { %1832 = vmatprep.subr.mxu0 %v2061_v16 }
 0x771   :  { %1819 = vmatmul.mubr.msk.f32.vlgmr.msra.gmra.mrb[20].mxu0 %vm499_vm3, %v1794_v14 }
 0x772   :  { %1833 = vmatpush3.msra.mxu0 %v1610_v51  ;;  %1834 = vmatprep.mubr.msk.f32.mxu0 %vm2060_vm1, %v2061_v16 }
 0x83b   :  { %v1815_v10 = vpop.f32.mrb[18].mxu0 }
 0x83c   :  { %v1202_v13 = vadd.f32 %v1815_v10, %v1794_v14  ;;  %v1192_v17 = vpop.f32.mrb[19].mxu0 }
 0x83d   :  { %v1201_v18 = vadd.f32 %v1192_v17, %v963_v15 }
 0x83e   :  { %1930 = vtanh.f32 %v1202_v13 }
 0x83f   :  { %1932 = vtanh.f32 %v1201_v18 }
 0x844   :  { %v1820_v19 = vpop.f32.mrb[20].mxu0 }
 0x845   :  { %v1290_v20 = vadd.f32 %v1820_v19, %v1799_v0  ;;  %v1280_v21 = vpop.f32.mrb[21].mxu0 }
 0x846   :  { %v1289_v22 = vadd.f32 %v1280_v21, %v1041_v1 }
 0x847   :  { %1934 = vtanh.f32 %v1290_v20 }
 0x848   :  { %v1931_v23 = vpop.eup %1930  ;;  %1936 = vtanh.f32 %v1289_v22 }
 0x849   :  { %v1933_v24 = vpop.eup %1932  ;;  %v1294_v25 = vmul.f32 %v1931_v23, %v2273_v32 }
 0x84a   :  { %v1293_v26 = vmul.f32 %v1933_v24, %v2270_v28 }
 0x84b   :  { %v1296_v16 = vsel %vm499_vm3, %v1294_v25, 0.0 }
 0x84c   :  { %v1295_v27 = vsel %vm499_vm3, %v1293_v26, 0.0 }
 0x84d   :  { %v1297_v29 = vadd.f32 %v1296_v16, %v1295_v27 }
 0x84f   :  { %v1298_v45 = vrot.slane %v1297_v29, 4 }
 0x851   :  { %v1935_v30 = vpop.eup %1934  ;;  %v1299_v47 = vadd.f32 %v1298_v45, %v1297_v29 }
 0x852   :  { %v1937_v31 = vpop.eup %1936  ;;  %v1316_v34 = vmul.f32 %v1935_v30, %v2242_v42 }
 0x853   :  { %v1315_v36 = vmul.f32 %v1937_v31, %v2240_v40  ;;  %v1300_v40 = vrot.slane %v1299_v47, 2 }
 0x854   :  { %v1318_v33 = vsel %vm413_vm2, %v1316_v34, 0.0 }
 0x855   :  { %v1317_v35 = vsel %vm413_vm2, %v1315_v36, 0.0  ;;  %v1301_v49 = vadd.f32 %v1300_v40, %v1299_v47 }
 0x856   :  { %v1319_v37 = vadd.f32 %v1318_v33, %v1317_v35 }
 0x857   :  { %v1302_v5 = vrot.slane %v1301_v49, 1 }
 0x858   :  { %v1320_v38 = vrot.slane %v1319_v37, 4 }
 0x859   :  { %v1303_v9 = vadd.f32 %v1302_v5, %v1301_v49 }
 0x85a   :  { %v1321_v32 = vadd.f32 %v1320_v38, %v1319_v37 }
 0x85b   :  { %v1304_v11 = vsel %vm499_vm3, %v1303_v9, -inf }
 0x85c   :  { %v1322_v39 = vrot.slane %v1321_v32, 2 }
 0x85e   :  { %v1323_v28 = vadd.f32 %v1322_v39, %v1321_v32 }
 0x860   :  { %v1324_v41 = vrot.slane %v1323_v28, 1 }
 0x862   :  { %v1325_v43 = vadd.f32 %v1324_v41, %v1323_v28 }
 0x864   :  { %v1326_v44 = vsel %vm413_vm2, %v1325_v43, -inf }
 0x865   :  { %1327 = vmax.xlane.f32.xlu0 %v1326_v44 }
 0x8f2   :  { %v1328_v46 = vpop.xlane.xlu0 %1327 }
 0x8f3   :  { %v1329_v42 = vsub.f32 %v1325_v43, %v1328_v46 }
 0x8f5   :  { %v1330_v48 = vmul.f32 1.442695, %v1329_v42 }
 0x8f7   :  { %1938 = vpow2.f32 %v1330_v48 }
 0x901   :  { %v1939_v7 = vpop.eup %1938 }
 0x902   :  { %v1332_v8 = vsel %vm413_vm2, %v1939_v7, 0.0 }
 0x903   :  { %1333 = vadd.xlane.f32.xlu0 %v1332_v8 }
 0x907   :  { %1305 = vmax.xlane.f32.xlu0 %v1304_v11 }
 0x990   :  { %v1334_v12 = vpop.xlane.xlu0 %1333 }
 0x991   :  { %1940 = vrcp.f32 %v1334_v12 }
 0x994   :  { %v1306_v50 = vpop.xlane.xlu0 %1305 }
 0x995   :  { %v1307_v51 = vsub.f32 %v1303_v9, %v1306_v50 }
 0x997   :  { %v1308_v3 = vmul.f32 1.442695, %v1307_v51 }
 0x999   :  { %1942 = vpow2.f32 %v1308_v3 }
 0x99b   :  { %v1941_v6 = vpop.eup %1940 }
 0x99c   :  { %v1336_v53 = vmul.f32 %v1941_v6, %v1939_v7 }
 0x99e   :  { %v1341_v54 = vsel %vm1340_vm9, %v1336_v53, -inf }
 0x99f   :  { %v1342_v55 = vsel %vm413_vm2, %v1341_v54, -inf }
 0x9a0   :  { %1343 = vmax.xlane.f32.xlu0 %v1342_v55 }
 0x9a3   :  { %v1943_v56 = vpop.eup %1942 }
 0x9a4   :  { %v1310_v57 = vsel %vm499_vm3, %v1943_v56, 0.0 }
 0x9a5   :  { %1311 = vadd.xlane.f32.xlu0 %v1310_v57 }
 0xa2d   :  { %v1344_v58 = vpop.xlane.xlu0 %1343 }
 0xa2e   :  { %v1345_v59 = vsub.f32 %v1341_v54, %v1344_v58 }
 0xa30   :  { %v1346_v60 = vmul.f32 1.442695, %v1345_v59 }
 0xa32   :  { %1944 = vpow2.f32 %v1346_v60  ;;  %v1312_v14 = vpop.xlane.xlu0 %1311 }
 0xa33   :  { %1946 = vrcp.f32 %v1312_v14 }
 0xa3c   :  { %v1945_v15 = vpop.eup %1944 }
 0xa3d   :  { %v1947_v61 = vpop.eup %1946  ;;  %v1348_v62 = vsel %vm413_vm2, %v1945_v15, 0.0 }
 0xa3e   :  { %v1314_v63 = vmul.f32 %v1947_v61, %v1943_v56  ;;  %1349 = vadd.xlane.f32.xlu0 %v1348_v62 }
 0xa40   :  { %1830 = vmatmul.mubr.msk.f32.vlgmr.msra.gmra.mrb[10].mxu1 %vm499_vm3, %v1314_v63  ;;  %1513 = vst.msk [vmem:[#allocation4 + $0x1] sm:$0x1] %vm1511_vm8, %v1314_v63 }
 0xacb   :  { %v1350_v0 = vpop.xlane.xlu0 %1349 }
 0xacc   :  { %1948 = vrcp.f32 %v1350_v0 }
 0xad6   :  { %v1949_v1 = vpop.eup %1948 }
 0xad7   :  { %v1352_v2 = vmul.f32 %v1949_v1, %v1945_v15 }
 0xad9   :  { %1835 = vmatmul.mubr.msk.f32.vlgmr.msra.gmra.mrb[22].mxu0 %vm413_vm2, %v1352_v2  ;;  %1516 = vst.msk [vmem:[#allocation6 + $0x1] sm:$0x1] %vm1514_vm5, %v1352_v2 }
 0xb13   :  { %v1434_v4 = vpop.f32.mrb[10].mxu1 }
 0xb14   :  { %1519 = vst.msk [vmem:[#allocation8 + $0x1] sm:$0x1] %vm1517_vm7, %v1434_v4  ;;  %v1831_v10 = vpop.f32.mrb[11].mxu1 }
 0xb15   :  { %1973 = shalt.err (!%p1970_p9)
}
 0xb16   :  { %s1974_s4 = scalar_lea.hbm %s2449_s9, 32 }
 0xb17   :  { %p1975_p10 = scmp.ne.s32.totalorder %s2449_s9, %s1974_s4  ;;  %p1978_p11 = scmp.lt.u32.totalorder %s1974_s4, %s2449_s9 }
 0xb19   :  { %p1980_p12 = pnand %p1978_p11, %p1975_p10 }
 0xb1b   :  { %1983 = shalt.err (!%p1980_p12)
}
 0xb1c   :  { %s2065_s28 = smov 16   ;;  %s2066_s29 = smov 1  }
 0xb1d   :  { %1545 = dma.vmem_to_hbm [thread:$0]  %s1540_s3, 32, %s2449_s9, [#allocation7], %s2065_s28, %s2065_s28, %s2066_s29  }
 0xb1e   :  { %s1984_s13 = scalar_lea.vmem %s1528_s23, 32  ;;  %p1989_p0 = scmp.lt.s32.totalorder %s1528_s23, %s1528_s23 }
 0xb1f   :  { %p1985_p13 = scmp.ne.s32.totalorder %s1528_s23, %s1984_s13  ;;  %p1990_p1 = scmp.lt.s32.totalorder %s1984_s13, %s1984_s13 }
 0xb21   :  { %p1991_p2 = por %p1990_p1, %p1989_p0 }
 0xb23   :  { %p1992_p3 = pnand %p1991_p2, %p1985_p13 }
 0xb25   :  { %1995 = shalt.err (!%p1992_p3)
}
 0xb26   :  { %s1996_s16 = scalar_lea.hbm %s2448_s8, 32 }
 0xb27   :  { %p1997_p4 = scmp.ne.s32.totalorder %s2448_s8, %s1996_s16  ;;  %p2000_p5 = scmp.lt.u32.totalorder %s1996_s16, %s2448_s8 }
 0xb29   :  { %p2002_p6 = pnand %p2000_p5, %p1997_p4 }
 0xb2b   :  { %2005 = shalt.err (!%p2002_p6)
}
 0xb2c   :  { %1533 = dma.vmem_to_hbm [thread:$0]  %s1528_s23, 32, %s2448_s8, [#allocation5], %s2065_s28, %s2065_s28, %s2066_s29  }
 0xb2d   :  { %s2067_s20 = smov [#allocation8]  }
 0xb2e   :  { %s1551_s2 = sshll.u32 %s2067_s20, 4  ;;  %s1552_s2 = int_to_ptr.vmem [resolvable:$true] %s1551_s2 }
 0xb2f   :  { %s2006_s21 = scalar_lea.vmem %s1552_s2, 32  ;;  %p2011_p8 = scmp.lt.s32.totalorder %s1552_s2, %s1552_s2 }
 0xb30   :  { %p2007_p7 = scmp.ne.s32.totalorder %s1552_s2, %s2006_s21  ;;  %p2012_p9 = scmp.lt.s32.totalorder %s2006_s21, %s2006_s21 }
 0xb32   :  { %p2013_p10 = por %p2012_p9, %p2011_p8 }
 0xb34   :  { %p2014_p11 = pnand %p2013_p10, %p2007_p7 }
 0xb36   :  { %2017 = shalt.err (!%p2014_p11)
}
 0xb37   :  { %s2018_s0 = scalar_lea.hbm %s2450_s10, 32 }
 0xb38   :  { %p2019_p12 = scmp.ne.s32.totalorder %s2450_s10, %s2018_s0  ;;  %p2022_p13 = scmp.lt.u32.totalorder %s2018_s0, %s2450_s10 }
 0xb3a   :  { %p2024_p0 = pnand %p2022_p13, %p2019_p12 }
 0xb3c   :  { %2027 = shalt.err (!%p2024_p0)
}
 0xb3d   :  { %1557 = dma.vmem_to_hbm [thread:$0]  %s1552_s2, 32, %s2450_s10, [#allocation7], %s2065_s28, %s2065_s28, %s2066_s29  }
 0xb3e   :  { %s2068_s26 = smov [#allocation9]  }
 0xb3f   :  { %s1563_s27 = sshll.u32 %s2068_s26, 4  ;;  %s1564_s27 = int_to_ptr.vmem [resolvable:$true] %s1563_s27 }
 0xb40   :  { %s2028_s7 = scalar_lea.vmem %s1564_s27, 32  ;;  %p2033_p2 = scmp.lt.s32.totalorder %s1564_s27, %s1564_s27 }
 0xb41   :  { %p2029_p1 = scmp.ne.s32.totalorder %s1564_s27, %s2028_s7  ;;  %p2034_p3 = scmp.lt.s32.totalorder %s2028_s7, %s2028_s7 }
 0xb43   :  { %p2035_p4 = por %p2034_p3, %p2033_p2 }
 0xb45   :  { %p2036_p5 = pnand %p2035_p4, %p2029_p1 }
 0xbac   :  { %v1507_v13 = vpop.f32.mrb[22].mxu0 }
 0xbad   :  { %1521 = vst.msk [vmem:[#allocation9 + $0x1] sm:$0x1] %vm1517_vm7, %v1507_v13  ;;  %v1836_v17 = vpop.f32.mrb[23].mxu0 }
 0xbae   :  { %2039 = shalt.err (!%p2036_p5)
}
 0xbaf   :  { %s2040_s13 = scalar_lea.hbm %s2451_s11, 32 }
 0xbb0   :  { %p2041_p6 = scmp.ne.s32.totalorder %s2451_s11, %s2040_s13  ;;  %p2044_p7 = scmp.lt.u32.totalorder %s2040_s13, %s2451_s11 }
 0xbb2   :  { %p2046_p8 = pnand %p2044_p7, %p2041_p6 }
 0xbb4   :  { %2049 = shalt.err (!%p2046_p8)
}
 0xbb5   :  { %1569 = dma.vmem_to_hbm [thread:$0]  %s1564_s27, 32, %s2451_s11, [#allocation10], %s2065_s28, %s2065_s28, %s2066_s29  }
 0xbb6   :  { %2052 = dma.done.wait [#allocation5], 32  }
 0xbb7   :  { %2053 = vsyncadd [#allocation5], 4294967264 }
 0xbb8   :  { %2054 = dma.done.wait [#allocation7], 64  }
 0xbb9   :  { %2055 = vsyncadd [#allocation7], 4294967232 }
 0xbba   :  { %2056 = dma.done.wait [#allocation10], 32  }
 0xbbb   :  { %2057 = vsyncadd [#allocation10], 4294967264 }
 0xbbc   :  { %1582 = vsyncpa [#allocation5], 1 }
 0xbbd   :  { %1583 = vsyncpa [#allocation7], 1 }
 0xbbe   :  { %1584 = vsyncpa [#allocation10], 1 }

</bundles_post_ra>
